<compile_context>
chip_gen: v5e
topology: v5e:2x2
jax: 0.10.0
libtpu: 0.0.40
codegen_flags: <defaults>
</compile_context>

<pallas_src>
import functools

import jax
import jax.numpy as jnp
from jax.experimental import pallas as pl
from jax.experimental.pallas import tpu as pltpu


def _round_up(x, m):
    return (x + m - 1) // m * m


def _vmem_budget_bytes():
    """Working VMEM budget derived from physical VMEM (headroom for Mosaic)."""
    phys = 64 << 20
    try:
        info = pltpu.get_tpu_info()
        phys = int(getattr(info, "vmem_capacity_bytes", phys)) or phys
    except Exception:
        pass
    # 64 MiB (v7x) -> 48 MiB working cap; 128 MiB (v5e/v6e) -> 112 MiB.
    return max(min(phys - (16 << 20), 112 << 20), 32 << 20)


def _conv_tap_kernel(xa_ref, xh_ref, w_ref, o_ref, *, ksize, hidden, tile_s,
                     cdtype):
    """One grid step: fused im2col + K-tap matmul.

    xa_ref: (1, tile_s, H)   aligned rows of the seq-padded input
    xh_ref: (1, halo,  H)    halo rows immediately following xa
    w_ref : (K*H, tile_n)    per-tap weights stacked along rows (row k*H..k*H+H
                             is W_k with W_k[i, o] = weight[o, i, k])
    o_ref : (1, tile_s, tile_n)
    """
    xa = xa_ref[0].astype(cdtype)
    xh = xh_ref[0].astype(cdtype)
    slab = jnp.concatenate([xa, xh], axis=0)            # (tile_s + halo, H)
    acc = None
    for k in range(ksize):                              # static, small K
        xk = slab[k:k + tile_s, :]                      # sublane shift (XLU)
        wk = w_ref[k * hidden:(k + 1) * hidden, :]      # static weight slice
        part = jnp.dot(xk, wk, preferred_element_type=jnp.float32)
        acc = part if acc is None else acc + part
    o_ref[0] = acc.astype(o_ref.dtype)


def cnn_forward(x, weight, *, compute_dtype=jnp.bfloat16):
    """Pallas equivalent of CNN.forward.

    x:      (B, S, H)          activations
    weight: (H_out, H_in, K)   PyTorch Conv1d weight layout, bias=False
    returns (B, S_out, H)      (S_out == S for odd K, mirrors PyTorch)

    compute_dtype=bfloat16 casts MXU operands to bf16 (f32 accumulation);
    use compute_dtype=jnp.float32 for full PyTorch-f32 precision.
    """
    b, s, h = x.shape
    h_out, h_in, ksize = weight.shape
    assert h_in == h and h_out == h
    pad = (ksize - 1) // 2
    s_out = s + 2 * pad - (ksize - 1)
    out_dtype = x.dtype

    x_bytes = jnp.dtype(x.dtype).itemsize
    c_bytes = jnp.dtype(compute_dtype).itemsize
    o_bytes = jnp.dtype(out_dtype).itemsize

    kh = ksize * h
    halo = _round_up(max(ksize - 1, 1), 8)          # halo rows (>= K-1, 8-aligned)

    # Lane-dense output: pad H_out up to the next multiple of 128.
    n_p = _round_up(h_out, 128)

    cap = _vmem_budget_bytes()
    working = cap - (8 << 20)

    # --- weight tile: keep the whole weight resident when it fits -----------
    tile_n = 128
    for d in range(n_p // 128, 0, -1):
        t = d * 128
        if n_p % t == 0 and 2 * kh * t * c_bytes <= working // 2:
            tile_n = t
            break
    num_n = n_p // tile_n

    # --- row tile: as many output rows per step as the budget allows --------
    def footprint(ts):
        buf = 2 * ts * h * x_bytes                 # x main block (dbl-buffered)
        buf += 2 * halo * h * x_bytes              # halo block
        buf += 2 * kh * tile_n * c_bytes           # weight block
        buf += 2 * ts * tile_n * o_bytes           # output block
        # in-kernel temporaries: cast slab, shifted operand, f32 accumulator
        buf += (ts + halo) * h * (x_bytes + c_bytes) + ts * tile_n * 4
        return buf

    s_cap = _round_up(s_out, halo)
    if s_cap <= 4096 and footprint(s_cap) <= working:
        tile_s = s_cap                             # one seq tile: no seq crop
    else:
        tile_s = halo
        for cand in (4096, 2048, 1024, 512, 256, 128, 64, 32, 16, 8):
            if cand % halo == 0 and cand <= s_cap and footprint(cand) <= working:
                tile_s = cand
                break
    s_out_p = _round_up(s_out, tile_s)
    num_s = s_out_p // tile_s
    halo_blocks = tile_s // halo

    # Sequence padding: 'same' left pad plus enough trailing rows so the last
    # tile's window and halo block stay in bounds (single cheap pad pass; the
    # K*-sized im2col buffer of the previous version is gone).
    s_pad_total = s_out_p + halo
    x_pad = jnp.pad(x, ((0, 0), (pad, s_pad_total - pad - s), (0, 0)))

    # Weight (H_out, H_in, K) -> (K*H_in, n_p); row block k is W_k.
    w_col = jnp.transpose(weight, (2, 1, 0)).reshape(kh, h_out)
    if n_p != h_out:
        w_col = jnp.pad(w_col, ((0, 0), (0, n_p - h_out)))
    w_col = w_col.astype(compute_dtype)

    kernel = functools.partial(_conv_tap_kernel, ksize=ksize, hidden=h,
                               tile_s=tile_s, cdtype=compute_dtype)

    vmem_limit = int(min(cap, max(footprint(tile_s) + (8 << 20), 32 << 20)))

    cost = pl.CostEstimate(
        flops=int(2 * b * s_out_p * kh * n_p),
        transcendentals=0,
        bytes_accessed=int(num_n * b * s_pad_total * h * x_bytes
                           + kh * n_p * c_bytes
                           + b * s_out_p * n_p * o_bytes),
    )

    # Grid: N tiles (usually 1) outermost and sequential, batch/seq parallel
    # (megacore).  The weight block index only changes with the outer axis,
    # so it is never re-DMA'd inside the batch/seq loops.
    out_p = pl.pallas_call(
        kernel,
        out_shape=jax.ShapeDtypeStruct((b, s_out_p, n_p), out_dtype),
        grid=(num_n, b, num_s),
        in_specs=[
            pl.BlockSpec((1, tile_s, h), lambda j, bb, i: (bb, i, 0)),
            pl.BlockSpec((1, halo, h),
                         lambda j, bb, i: (bb, (i + 1) * halo_blocks, 0)),
            pl.BlockSpec((kh, tile_n), lambda j, bb, i: (0, j)),
        ],
        out_specs=pl.BlockSpec((1, tile_s, tile_n),
                               lambda j, bb, i: (bb, i, j)),
        compiler_params=pltpu.CompilerParams(
            dimension_semantics=("arbitrary", "parallel", "parallel"),
            vmem_limit_bytes=vmem_limit,
        ),
        cost_estimate=cost,
    )(x_pad, x_pad, w_col)

    if s_out_p != s_out or n_p != h_out:
        return out_p[:, :s_out, :h_out]
    return out_p


def _reference_conv1d(x, weight):
    """Pure-JAX reference replicating nn.Conv1d(..., bias=False, padding=pad)."""
    pad = (weight.shape[-1] - 1) // 2
    x_ncl = jnp.transpose(x, (0, 2, 1))
    out = jax.lax.conv_general_dilated(
        x_ncl, weight,
        window_strides=(1,),
        padding=[(pad, pad)],
        dimension_numbers=("NCH", "OIH", "NCH"),
        precision=jax.lax.Precision.HIGHEST,
    )
    return jnp.transpose(out, (0, 2, 1))


if __name__ == "__main__":
    # Config implied by the module: hidden_size, kernel_size.
    batch, seq, hidden, ksize = 2, 8, 32, 3

    key = jax.random.PRNGKey(0)
    kx, kw = jax.random.split(key)
    x = jax.random.normal(kx, (batch, seq, hidden), dtype=jnp.float32)
    bound = 1.0 / (hidden * ksize) ** 0.5
    weight = jax.random.uniform(kw, (hidden, hidden, ksize),
                                minval=-bound, maxval=bound,
                                dtype=jnp.float32)

    ref = _reference_conv1d(x, weight)

    # f32 operand path: validates the fused im2col / weight mapping.
    out_f32 = jax.block_until_ready(
        cnn_forward(x, weight, compute_dtype=jnp.float32))
    assert out_f32.shape == ref.shape == (batch, seq, hidden)
    assert jnp.allclose(out_f32, ref, atol=1e-3, rtol=1e-3), (
        float(jnp.max(jnp.abs(out_f32 - ref))))

    # Default perf path: bf16 MXU operands, f32 accumulation.
    out_bf16 = jax.block_until_ready(cnn_forward(x, weight))
    assert out_bf16.shape == ref.shape
    assert jnp.allclose(out_bf16, ref, atol=3e-2, rtol=3e-2), (
        float(jnp.max(jnp.abs(out_bf16 - ref))))

    print("KERNEL_OK")
</pallas_src>

<mosaic_0001>
module attributes {stable_mosaic.version = 11 : i64} {
  func.func @_conv_tap_kernel(%arg0: i32, %arg1: i32, %arg2: i32, %arg3: memref<1x8x32xf32, #tpu.memory_space<vmem>>, %arg4: memref<1x8x32xf32, #tpu.memory_space<vmem>>, %arg5: memref<96x128xf32, #tpu.memory_space<vmem>>, %arg6: memref<1x8x128xf32, #tpu.memory_space<vmem>>) attributes {dimension_semantics = [#tpu.dimension_semantics<arbitrary>, #tpu.dimension_semantics<parallel>, #tpu.dimension_semantics<parallel>], iteration_bounds = array<i64: 1, 2, 1>, scalar_prefetch = 0 : i64, scratch_operands = 0 : i64, tpu.core_type = #tpu.core_type<tc>, window_params = [{transform_indices = @transform_0, window_bounds = array<i64: 1, 8, 32>}, {transform_indices = @transform_1, window_bounds = array<i64: 1, 8, 32>}, {transform_indices = @transform_2, window_bounds = array<i64: 96, 128>}, {transform_indices = @transform_3, window_bounds = array<i64: 1, 8, 128>}]} {
    %c0 = arith.constant 0 : index
    %c0_0 = arith.constant 0 : index
    %c0_1 = arith.constant 0 : index
    %0 = vector.load %arg3[%c0, %c0_0, %c0_1] : memref<1x8x32xf32, #tpu.memory_space<vmem>>, vector<1x8x32xf32>
    %1 = vector.shape_cast %0 : vector<1x8x32xf32> to vector<8x32xf32>
    %c0_2 = arith.constant 0 : index
    %c0_3 = arith.constant 0 : index
    %c0_4 = arith.constant 0 : index
    %2 = vector.load %arg4[%c0_2, %c0_3, %c0_4] : memref<1x8x32xf32, #tpu.memory_space<vmem>>, vector<1x8x32xf32>
    %3 = vector.shape_cast %2 : vector<1x8x32xf32> to vector<8x32xf32>
    %4 = tpu.concatenate %1, %3 in 0 : vector<8x32xf32>, vector<8x32xf32> -> vector<16x32xf32>
    %5 = vector.extract_strided_slice %4 {offsets = [0, 0], sizes = [8, 32], strides = [1, 1]} : vector<16x32xf32> to vector<8x32xf32>
    %c0_5 = arith.constant 0 : index
    %c0_6 = arith.constant 0 : index
    %6 = vector.load %arg5[%c0_5, %c0_6] : memref<96x128xf32, #tpu.memory_space<vmem>>, vector<32x128xf32>
    %cst = arith.constant dense<0.000000e+00> : vector<8x128xf32>
    %7 = tpu.matmul %5, %6, %cst {dimension_numbers = #tpu.dot_dimension_numbers<[1], [0], [0], [1], [0, 0, 1, 1], [], []>} : vector<8x32xf32>, vector<32x128xf32>, vector<8x128xf32> -> vector<8x128xf32>
    %8 = vector.extract_strided_slice %4 {offsets = [1, 0], sizes = [8, 32], strides = [1, 1]} : vector<16x32xf32> to vector<8x32xf32>
    %c32 = arith.constant 32 : index
    %c0_7 = arith.constant 0 : index
    %9 = vector.load %arg5[%c32, %c0_7] : memref<96x128xf32, #tpu.memory_space<vmem>>, vector<32x128xf32>
    %cst_8 = arith.constant dense<0.000000e+00> : vector<8x128xf32>
    %10 = tpu.matmul %8, %9, %cst_8 {dimension_numbers = #tpu.dot_dimension_numbers<[1], [0], [0], [1], [0, 0, 1, 1], [], []>} : vector<8x32xf32>, vector<32x128xf32>, vector<8x128xf32> -> vector<8x128xf32>
    %11 = arith.addf %7, %10 : vector<8x128xf32>
    %12 = vector.extract_strided_slice %4 {offsets = [2, 0], sizes = [8, 32], strides = [1, 1]} : vector<16x32xf32> to vector<8x32xf32>
    %c64 = arith.constant 64 : index
    %c0_9 = arith.constant 0 : index
    %13 = vector.load %arg5[%c64, %c0_9] : memref<96x128xf32, #tpu.memory_space<vmem>>, vector<32x128xf32>
    %cst_10 = arith.constant dense<0.000000e+00> : vector<8x128xf32>
    %14 = tpu.matmul %12, %13, %cst_10 {dimension_numbers = #tpu.dot_dimension_numbers<[1], [0], [0], [1], [0, 0, 1, 1], [], []>} : vector<8x32xf32>, vector<32x128xf32>, vector<8x128xf32> -> vector<8x128xf32>
    %15 = arith.addf %11, %14 : vector<8x128xf32>
    %c0_11 = arith.constant 0 : index
    %c0_12 = arith.constant 0 : index
    %c0_13 = arith.constant 0 : index
    %16 = vector.load %arg6[%c0_11, %c0_12, %c0_13] : memref<1x8x128xf32, #tpu.memory_space<vmem>>, vector<1x8x128xf32>
    %17 = vector.shape_cast %16 : vector<1x8x128xf32> to vector<8x128xf32>
    %18 = vector.shape_cast %15 : vector<8x128xf32> to vector<1x8x128xf32>
    tpu.vector_store %arg6[%c0_11, %c0_12, %c0_13], %18 {strides = array<i32>} : memref<1x8x128xf32, #tpu.memory_space<vmem>>, vector<1x8x128xf32>,
    return
  }
  func.func @transform_0(%arg0: i32, %arg1: i32, %arg2: i32) -> (i32, i32, i32) {
    %c0_i32 = arith.constant 0 : i32
    %c0_i32_0 = arith.constant 0 : i32
    return %arg1, %arg2, %c0_i32 : i32, i32, i32
  }
  func.func @transform_1(%arg0: i32, %arg1: i32, %arg2: i32) -> (i32, i32, i32) {
    %c1_i32 = arith.constant 1 : i32
    %0 = arith.addi %arg2, %c1_i32 : i32
    %c1_i32_0 = arith.constant 1 : i32
    %1 = arith.muli %0, %c1_i32_0 : i32
    %c0_i32 = arith.constant 0 : i32
    %c0_i32_1 = arith.constant 0 : i32
    return %arg1, %1, %c0_i32 : i32, i32, i32
  }
  func.func @transform_2(%arg0: i32, %arg1: i32, %arg2: i32) -> (i32, i32) {
    %c0_i32 = arith.constant 0 : i32
    %c0_i32_0 = arith.constant 0 : i32
    return %c0_i32, %arg0 : i32, i32
  }
  func.func @transform_3(%arg0: i32, %arg1: i32, %arg2: i32) -> (i32, i32, i32) {
    %c0_i32 = arith.constant 0 : i32
    return %arg1, %arg2, %arg0 : i32, i32, i32
  }
}

</mosaic_0001>

<bundles_post_ra>
// kernel: tpu_custom_call.1
= control target key start
LH: loop header
LB: loop body
LE: loop exit
PB: predicated region body
PF: predicated region fallthrough
CT: control target
= control target key end

     0   :  { %s986_s0 = inlined_call_operand.hbm [shape: f32[2,16,32], index: 0, kind: input, shape index: {}]   ;;  %s987_s1 = inlined_call_operand.hbm [shape: f32[2,16,32], index: 1, kind: input, shape index: {}]   ;;  %s988_s2 = inlined_call_operand.hbm [shape: f32[96,128], index: 2, kind: input, shape index: {}]   ;;  %s989_s3 = inlined_call_operand.hbm [shape: f32[2,8,128], index: 3, kind: output, shape index: {}]  }
   0x1   :  { %993 = sst [smem:[#allocation17_spill]] %s988_s2 }
   0x2   :  { %8 = vsyncpa [#allocation3], 0 }
   0x3   :  { %10 = vsyncpa [#allocation3 + $0x1], 0 }
   0x4   :  { %11 = vsyncpa [#allocation6], 0 }
   0x5   :  { %13 = vsyncpa [#allocation6 + $0x1], 0 }
   0x6   :  { %14 = vsyncpa [#allocation4], 0 }
   0x7   :  { %16 = vsyncpa [#allocation4 + $0x1], 0  ;;  %s828_s12 = smov 0   ;;  %s830_s13 = smov 0  }
   0x8   :  { %s832_s14 = smov 0   ;;  %s834_s15 = smov 0  }
   0x9   :  { %s836_s16 = smov 0   ;;  %s838_s17 = smov 0  }
   0xa LB: > { %994 = sst [smem:[#allocation13_spill]] %s791_s14  ;;  %s859_s18 = sadd.s32 4294967295, %s803_s17   ;;  %s803_s17 = sphi %s838_s17, %s22_s17   ;;  %s799_s16 = sphi %s836_s16, %s1007_s16   ;;  %s795_s15 = sphi %s834_s15, %s1006_s15   ;;  %s791_s14 = sphi %s832_s14, %s1005_s14   ;;  %s787_s13 = sphi %s830_s13, %s1009_s13   ;;  %s783_s12 = sphi %s828_s12, %s1008_s12  }
   0xb   : > { %995 = sst [smem:[#allocation14_spill]] %s799_s16  ;;  %p520_p0 = scmp.ge.s32.totalorder %s803_s17, 1 }
   0xc   : > { %p64_p1 = scmp.eq.s32.totalorder %s859_s18, 0  ;;  %p160_p2 = scmp.lt.s32.totalorder %s803_s17, 3 }
   0xd   : > { %s996_s2 = sld [smem:[#allocation17_spill]]  ;;  %s805_s23 = smov [#allocation7]  }
   0xe   : > { %p867_p3 = pnand %p520_p0, %p160_p2  ;;  %s175_s24 = sshll.u32 %s805_s23, 4  ;;  %s176_s24 = int_to_ptr.vmem [resolvable:$true] %s175_s24 }
   0xf   : > { %p522_p6 = scmp.ge.s32.totalorder %s803_s17, 2  ;;  %s806_s25 = smov 128  }
  0x10   : > { %p553_p4 = pneg %p867_p3  ;;  %s807_s26 = smov 8  }
  0x11   : > { %s519_s27 = sadd.s32 4294967294, %s803_s17   ;;  %s37_s28 = sadd.s32 1, %s799_s16 }
  0x12   : > { %p554_p5 = pnand %p553_p4, %p64_p1  ;;  %s50_s29 = sadd.s32 1, %s791_s14 }
  0x13   : > { %s173_s21 = sshll.u32 %s996_s2, 4  ;;  %p39_p7 = scmp.ge.s32.totalorder %s37_s28, 2  ;;  %s174_s21 = int_to_ptr.hbm [resolvable:$true] %s173_s21 }
  0x14   : > { %556 = dma.hbm_to_vmem [thread:$0]  (!%p554_p5), %s174_s21, 1536, %s176_s24, [#allocation6], %s806_s25, %s806_s25, %s807_s26  }
  0x15   : > { %p57_p8 = scmp.ne.s32.totalorder %s791_s14, %s787_s13  ;;  %p58_p9 = scmp.eq.s32.totalorder %s803_s17, 0 }
  0x16   : > { %p63_p10 = scmp.ne.s32.totalorder %s787_s13, %s783_s12  ;;  %s1011_s28 = smov (%p39_p7, %s37_s28), 0 }
  0x17   : > { %998 = sst [smem:[#allocation15_spill]] %s1011_s28  ;;  %p886_p11 = por %p58_p9, %p57_p8 }
  0x18   : > { %p892_p12 = por %p64_p1, %p63_p10  ;;  %s45_s5 = ssub.s32 %s799_s16, %s1011_s28 }
  0x19   : > { %p147_p13 = scmp.eq.s32.totalorder %s859_s18, 1  ;;  %p48_p0 = scmp.eq.s32.totalorder %s45_s5, 0 }
  0x1a   : > { %p153_p2 = scmp.eq.s32.totalorder %s519_s27, 1  ;;  %p569_p5 = scmp.lt.s32.totalorder %s803_s17, 2 }
  0x1b   : > { %p899_p4 = por %p147_p13, %p57_p8  ;;  %s189_s9 = sand.u32 1, %s791_s14  }
  0x1c   : > { %s905_s7 = scalar_select %p48_p0, %s791_s14, %s50_s29  }
  0x1d   : > { %p907_p7 = por %p153_p2, %p63_p10  ;;  %s523_s10 = sshll.u32 %s189_s9, 3 }
  0x1e   : > { %1002 = sst [smem:[#allocation16_spill]] %s905_s7  ;;  %s541_s11 = sshll.u32 %s799_s16, 4 }
  0x1f   : > { %s199_s21 = scalar_lea.hbm %s986_s0, %s541_s11  ;;  %s193_s23 = scalar_lea.vmem [#allocation2], %s523_s10 }
  0x20   : > { %s203_s24 = sshll.u32 %s193_s23, 4  ;;  %s201_s25 = sshll.u32 %s199_s21, 4  ;;  %s204_s24 = int_to_ptr.vmem [resolvable:$true] %s203_s24  ;;  %s202_s25 = int_to_ptr.hbm [resolvable:$true] %s201_s25 }
  0x21   : > { %p558_p8 = pnand %p569_p5, %p886_p11  ;;  %s438_s29 = scalar_lea.hbm %s987_s1, %s541_s11 }
  0x22   : > { %s210_s5 = sand.u32 1, %s803_s17   ;;  %s190_s2 = scalar_lea.sflag [#allocation3], %s189_s9 }
  0x23   : > { %560 = dma.hbm_to_vmem [thread:$0]  (!%p558_p8), %s202_s25, 128, %s204_s24, %s190_s2  }
  0x24   : > { %s439_s28 = scalar_lea.hbm %s438_s29, 8  ;;  %s214_s7 = scalar_lea.vmem [#allocation5], %s523_s10 }
  0x25   : > { %s223_s16 = sshll.u32 %s439_s28, 4  ;;  %s225_s14 = sshll.u32 %s214_s7, 4  ;;  %s224_s16 = int_to_ptr.hbm [resolvable:$true] %s223_s16  ;;  %s226_s14 = int_to_ptr.vmem [resolvable:$true] %s225_s14 }
  0x26   : > { %s211_s19 = scalar_lea.sflag [#allocation6], %s210_s5  ;;  %234 = sbr.rel (%p867_p3) target bundleno = 194 (0xc2), region = 32 }
  0x27   : > { %563 = dma.hbm_to_vmem [thread:$0]  (!%p558_p8), %s224_s16, 128, %s226_s14, %s211_s19  }
  0x28   : > { %s925_s30 = sand.u32 (!%p867_p3), 1, %s787_s13  }
  0x29   : > { %s928_s11 = sshll.u32 (!%p867_p3), %s925_s30, 3  ;;  %s237_s2 = scalar_lea.sflag (!%p867_p3), [#allocation3], %s925_s30 }
  0x2a   : > { %s240_s28 = scalar_lea.vmem (!%p867_p3), [#allocation2], %s928_s11 }
  0x2b   : > { %766 = dma.done.wait (%p892_p12), %s237_s2, 128  }
  0x2c   : > { %768 = vsyncadd (%p892_p12), %s237_s2, 4294967168  ;;  %s246_s14 = sand.u32 1, %s859_s18   ;;  %s250_s22 = scalar_lea.vmem [#allocation5], %s928_s11 }
  0x2d   : > { %s247_s16 = scalar_lea.sflag [#allocation6], %s246_s14 }
  0x2e   : > { %770 = dma.done.wait (%p892_p12), %s247_s16, 128  }
  0x2f   : > { %772 = vsyncadd (%p892_p12), %s247_s16, 4294967168 }
  0x30   : > { %774 = dma.done.wait (%p64_p1), [#allocation6], 1536  }
  0x31   : > { %776 = vsyncadd (%p64_p1), [#allocation6], 4294965760  ;;  %v349_v0 = vld [vmem:[#allocation7 + $0x58] sm:$0xff]  ;;  %v348_v1 = vld [vmem:[#allocation7 + $0x50] sm:$0xff]  ;;  %vm350_vm0 = vcmask 1045504   ;;  %vm297_vm1 = vcmask 1046528  }
  0x32   : > { %v294_v2 = vld [vmem:[#allocation7 + $0x38] sm:$0xff]  ;;  %368 = vmatpush.msra.mxu2 %v349_v0  ;;  %v293_v4 = vld [vmem:[#allocation7 + $0x30] sm:$0xff]  ;;  %v347_v5 = vld [vmem:[#allocation7 + $0x48] sm:$0xff]  ;;  %vm301_vm2 = vcmask 261120   ;;  %s538_s18 = sshll.u32 %s795_s15, 3  ;;  %s283_s10 = scalar_lea.vmem [#allocation8], %s928_s11 }
  0x33   : > { %316 = vmatpush.msra.mxu0 %v294_v2  ;;  %v290_v3 = vld [vmem:[#allocation7 + $0x18] sm:$0xff]  ;;  %v289_v6 = vld [vmem:[#allocation7 + $0x10] sm:$0xff]  ;;  %v285_v7 = vld [vmem:[%s240_s28] sm:$0xff]  ;;  %s391_s9 = scalar_lea.hbm %s989_s3, %s538_s18  ;;  %s393_s20 = sshll.u32 %s283_s10, 4  ;;  %s394_s20 = int_to_ptr.vmem [resolvable:$true] %s393_s20 }
  0x34   : > { %338 = vmatpush.msra.mxu1 %v290_v3  ;;  %369 = vmatpush.msra.mxu2 %v348_v1  ;;  %v286_v8 = vld [vmem:[%s250_s22] sm:$0xff]  ;;  %v351_v9 = vrot.slane %v285_v7, 2  ;;  %v292_v10 = vld [vmem:[#allocation7 + $0x28] sm:$0xff]  ;;  %v298_v12 = vrot.slane %v285_v7, 1  ;;  %v346_v13 = vld [vmem:[#allocation7 + $0x40] sm:$0xff]  ;;  %s395_s21 = sshll.u32 %s391_s9, 4  ;;  %s396_s21 = int_to_ptr.hbm [resolvable:$true] %s395_s21 }
  0x35   : > { %317 = vmatpush.msra.mxu0 %v293_v4  ;;  %v288_v11 = vld [vmem:[#allocation7 + $0x8] sm:$0xff]  ;;  %v352_v14 = vrot.slane %v286_v8, 2  ;;  %v291_v15 = vld [vmem:[#allocation7 + $0x20] sm:$0xff]  ;;  %v299_v16 = vrot.slane %v286_v8, 1  ;;  %s379_s23 = scalar_lea.sflag [#allocation4], %s925_s30  ;;  %s727_s24 = sshra.s32 %s396_s21, 4  ;;  %s728_s24 = int_to_ptr.hbm [resolvable:$true] %s727_s24 }
  0x36   : > { %339 = vmatpush.msra.mxu1 %v289_v6  ;;  %370 = vmatpush.msra.mxu2 %v347_v5  ;;  %v287_v17 = vld [vmem:[#allocation7] sm:$0xff]  ;;  %s729_s15 = scalar_lea.hbm %s728_s24, 8  ;;  %s733_s27 = scalar_lea.hbm %s989_s3, 16 }
  0x37   : > { %318 = vmatpush.msra.mxu0 %v292_v10  ;;  %v353_v18 = vsel %vm350_vm0, %v351_v9, %v352_v14  ;;  %v300_v19 = vsel %vm297_vm1, %v298_v12, %v299_v16  ;;  %p730_p1 = scmp.ne.s32.totalorder %s728_s24, %s729_s15  ;;  %p734_p10 = scmp.lt.s32.totalorder %s728_s24, %s989_s3 }
  0x38   : > { %340 = vmatpush.msra.mxu1 %v288_v11  ;;  %371 = vmatpush.msra.mxu2 %v346_v13  ;;  %p735_p11 = scmp.lt.s32.totalorder %s733_s27, %s729_s15 }
  0x39   : > { %319 = vmatpush.msra.mxu0 %v291_v15  ;;  %536 = vmatmul.msk.f32.vlgmr.msra.gmra.mxu2 %vm301_vm2, %v353_v18  ;;  %p731_p3 = pnand %p730_p1, %p899_p4 }
  0x3a   : > { %341 = vmatpush.msra.mxu1 %v287_v17  ;;  %534 = vmatmul.msk.f32.vlgmr.msra.gmra.mxu0 %vm301_vm2, %v300_v19  ;;  %p736_p12 = por %p735_p11, %p734_p10 }
  0x3b   : > { %535 = vmatmul.msk.f32.vlgmr.msra.gmra.mxu1 %vm301_vm2, %v285_v7  ;;  %p732_p9 = pneg %p731_p3 }
  0x3d   : > { %p737_p13 = pnand %p736_p12, %p732_p9 }
  0xb7   : > { %v321_v20 = vpop.f32.mrf.mxu0 }
  0xb8   : > { %v343_v21 = vpop.f32.mrf.mxu1 }
  0xb9   : > { %v344_v22 = vadd.f32 %v343_v21, %v321_v20 }
  0xbc   : > { %v373_v23 = vpop.f32.mrf.mxu2 }
  0xbd   : > { %v376_v24 = vadd.f32 %v373_v23, %v344_v22 }
  0xbf   : > { %377 = vst [vmem:[%s283_s10] sm:$0xff] %v376_v24 }
  0xc0   : > { %740 = shalt.err (!%p737_p13)
}
  0xc1   : > { %551 = dma.vmem_to_hbm [thread:$0]  (%p899_p4), %s394_s20, 128, %s396_s21, %s379_s23  }
  0xc2 PF: > { %s407_s19 = sand.u32 1, %s783_s12   ;;  %p565_p0 = pnand %p522_p6, %p907_p7 }
  0xc3   : > { %s408_s30 = scalar_lea.sflag [#allocation4], %s407_s19 }
  0xc4   : > { %p566_p2 = pneg %p565_p0 }
  0xc6   : > { %778 = dma.done.wait (%p566_p2), %s408_s30, 128  }
  0xc7   : > { %780 = vsyncadd (%p566_p2), %s408_s30, 4294967168  ;;  %s22_s17 = sadd.s32 1, %s803_s17   ;;  %s1004_s11 = sld [smem:[#allocation13_spill]] }
  0xc8   : > { %p19_p5 = scmp.ge.s32.totalorder %s22_s17, 4   ;;  %s1005_s14 = sld [smem:[#allocation16_spill]] }
  0xc9   : > { %s1006_s15 = sld [smem:[#allocation14_spill]]  ;;  %s1008_s12 = smov %s787_s13 }
  0xca   : > { %s1007_s16 = sld [smem:[#allocation15_spill]]  ;;  %21 = sbr.rel (!%p19_p5) target bundleno = 10 (0xa), region = 95 }
  0xcd   : > { %s1009_s13 = smov %s1004_s11 }
  0xcf   :  { %414 = vsyncpa [#allocation3], 1 }
  0xd0   :  { %416 = vsyncpa [#allocation3 + $0x1], 1 }
  0xd1   :  { %417 = vsyncpa [#allocation6], 1 }
  0xd2   :  { %419 = vsyncpa [#allocation6 + $0x1], 1 }
  0xd3   :  { %420 = vsyncpa [#allocation4], 1 }
  0xd4   :  { %422 = vsyncpa [#allocation4 + $0x1], 1 }

</bundles_post_ra>
